<compile_context>
chip_gen: v6e
topology: v6e:2x2x1
jax: 0.10.0
libtpu: 0.0.40
codegen_flags: <defaults>
</compile_context>

<pallas_src>
import functools

import jax
import jax.numpy as jnp
import numpy as np
from jax.experimental import pallas as pl
from jax.experimental.pallas import tpu as pltpu

PACK_NUM = 8  # 32 // w_bit, w_bit == 4


def make_divisible(c, divisor):
    return (c + divisor - 1) // divisor


def calculate_zeros_width(in_features, group_size=128, pack_num=8):
    if group_size >= 128:
        size_multiplier = 1
    elif group_size == 64:
        size_multiplier = 2
    elif group_size == 32:
        size_multiplier = 4
    else:
        raise NotImplementedError
    base_width = make_divisible(in_features // group_size, pack_num)
    base_width = make_divisible(base_width, size_multiplier) * size_multiplier
    return base_width


def _awq_kernel(x_ref, xg_ref, qw_ref, z_ref, s_ref, b_ref, o_ref, w_s):
    """One (O-tile, M-tile) grid step.

    x_ref : (TM, K)  bf16  x in permuted-K order: x_perm[m, j*Kp+kp] = x[m, 8*kp+j]
    xg_ref: (TM, G)  f32   per-group sums of x (original order)
    qw_ref: (Kp, TO) int32 packed 4-bit weights, transposed
    z_ref : (G, TO)  f32   per-group zero points, transposed
    s_ref : (G, TO)  f32   per-group scales, transposed
    b_ref : (1, TO)  f32   bias
    o_ref : (TM, TO)       output tile
    w_s   : (K, TO)  bf16  VMEM scratch: dequantized q*s weights (permuted-K)
    """
    kp = qw_ref.shape[0]
    g = s_ref.shape[0]
    gs8 = kp // g
    to = qw_ref.shape[1]

    # Dequantize the weight tile once per O tile, reuse across all M tiles.
    @pl.when(pl.program_id(1) == 0)
    def _dequant():
        s_bf = s_ref[...].astype(jnp.bfloat16)                      # (G, TO)
        s_rep = jnp.broadcast_to(s_bf[:, None, :], (g, gs8, to))
        s_rep = s_rep.reshape(kp, to)                               # (Kp, TO)
        qw = qw_ref[...]
        for j in range(PACK_NUM):            # static unroll over 8 nibbles
            q_j = ((qw >> (4 * j)) & 0xF).astype(jnp.bfloat16)      # (Kp, TO)
            w_s[j * kp:(j + 1) * kp, :] = q_j * s_rep

    # Main term: x_perm @ (q*s) -- single NN matmul on the MXU (f32 acc).
    acc = jax.lax.dot_general(
        x_ref[...], w_s[...],
        dimension_numbers=(((1,), (0,)), ((), ())),
        preferred_element_type=jnp.float32)                         # (TM, TO)

    # Zero-point correction: x_groupsum @ (z*s), tiny f32 matmul.
    zcorr = z_ref[...] * s_ref[...]                                 # (G, TO)
    corr = jax.lax.dot_general(
        xg_ref[...], zcorr,
        dimension_numbers=(((1,), (0,)), ((), ())),
        preferred_element_type=jnp.float32)                         # (TM, TO)

    o_ref[...] = (acc - corr + b_ref[...]).astype(o_ref.dtype)


def _pick_out_tile(out_features):
    # Largest lane-dense tile that still leaves >= 2 O tiles (keeps both
    # TensorCores of a v7x chip busy); else the largest divisor; else O.
    for cand in (512, 256, 128):
        if out_features % cand == 0 and out_features // cand >= 2:
            return cand
    for cand in (512, 256, 128):
        if out_features % cand == 0:
            return cand
    return out_features


def wq_linear_gemv_forward(x, qweight, qzeros, scales, bias,
                           in_features, out_features, group_size):
    """Pallas implementation of WQLinear_GEMV.forward (w_bit = 4)."""
    K, O = in_features, out_features
    assert K % group_size == 0 and group_size % PACK_NUM == 0
    Kp = K // PACK_NUM
    G = K // group_size

    # ---- glue (plain JAX layout plumbing) ---------------------------------
    # NOTE: in a real serving path the weight-side transposes / zero unpack
    # below are done once at weight-load time, not per forward call.
    x2d = x.reshape(-1, K)
    M = x2d.shape[0]
    x32 = x2d.astype(jnp.float32)
    xb = x2d.astype(jnp.bfloat16)
    # permuted-K ("nibble-major") order: x_perm[m, j*Kp + kp] = x[m, 8*kp + j]
    x_perm = xb.reshape(M, Kp, PACK_NUM).transpose(0, 2, 1).reshape(M, K)
    # per-group sums of x (f32) for the zero-point correction term
    x_gsum = x32.reshape(M, G, group_size).sum(axis=-1)              # (M, G)

    gidx = jnp.arange(G)
    z_g = ((qzeros[:, gidx // PACK_NUM] >> (4 * (gidx % PACK_NUM))) & 0xF
           ).astype(jnp.float32)                                     # (O, G)
    s_g = scales[:, :G].astype(jnp.float32)                          # (O, G)
    z_gt = z_g.T                                                     # (G, O)
    s_gt = s_g.T                                                     # (G, O)
    qw_t = qweight.T                                                 # (Kp, O)

    if bias is None:
        bias = jnp.zeros((O,), jnp.float32)
    b2d = bias.astype(jnp.float32).reshape(1, O)

    # ---- tiling ------------------------------------------------------------
    TO = _pick_out_tile(O)
    TM = 256 if M > 256 else M
    n_m = -(-M // TM)
    M_pad = n_m * TM
    if M_pad != M:
        x_perm = jnp.pad(x_perm, ((0, M_pad - M), (0, 0)))
        x_gsum = jnp.pad(x_gsum, ((0, M_pad - M), (0, 0)))
    n_o = O // TO
    grid = (n_o, n_m)   # O outer ("parallel"), M inner ("arbitrary")

    out2d = pl.pallas_call(
        _awq_kernel,
        out_shape=jax.ShapeDtypeStruct((M_pad, O), x.dtype),
        grid=grid,
        in_specs=[
            pl.BlockSpec((TM, K), lambda o, m: (m, 0)),     # x_perm
            pl.BlockSpec((TM, G), lambda o, m: (m, 0)),     # x_gsum
            pl.BlockSpec((Kp, TO), lambda o, m: (0, o)),    # qw_t (packed)
            pl.BlockSpec((G, TO), lambda o, m: (0, o)),     # zeros (grouped)
            pl.BlockSpec((G, TO), lambda o, m: (0, o)),     # scales (grouped)
            pl.BlockSpec((1, TO), lambda o, m: (0, o)),     # bias
        ],
        out_specs=pl.BlockSpec((TM, TO), lambda o, m: (m, o)),
        scratch_shapes=[pltpu.VMEM((K, TO), jnp.bfloat16)],
        compiler_params=pltpu.CompilerParams(
            dimension_semantics=("parallel", "arbitrary"),
            vmem_limit_bytes=48 * 1024 * 1024),
    )(x_perm, x_gsum, qw_t, z_gt, s_gt, b2d)

    out2d = out2d[:M]
    return out2d.reshape(x.shape[:-1] + (O,))


def reference_forward(x, qweight, qzeros, scales, bias, in_features, group_size):
    """Pure-JAX f32 reference (dequant + matmul), for correctness check."""
    K = in_features
    O = qweight.shape[0]
    i = jnp.arange(K)
    q = ((qweight[:, i // PACK_NUM] >> (4 * (i % PACK_NUM))) & 0xF
         ).astype(jnp.float32)
    g = i // group_size
    z = ((qzeros[:, g // PACK_NUM] >> (4 * (g % PACK_NUM))) & 0xF
         ).astype(jnp.float32)
    s = scales[:, g].astype(jnp.float32)
    W = (q - z) * s                                                  # (O, K)
    out = x.reshape(-1, K).astype(jnp.float32) @ W.T
    if bias is not None:
        out = out + bias
    return out.reshape(x.shape[:-1] + (O,)).astype(x.dtype)


if __name__ == "__main__":
    # Module config (synthetic, deterministic): 4-bit, group_size=32.
    in_features = 128
    out_features = 256
    group_size = 32
    batch, seq = 2, 8                    # x: (2, 8, 128) -> flattened M = 16

    zeros_width = calculate_zeros_width(in_features, group_size)     # 4
    Kp = in_features // PACK_NUM

    key = jax.random.PRNGKey(0)
    k_qw, k_qz, k_sc, k_b, k_x = jax.random.split(key, 5)

    # Deterministic synthetic parameters (shapes match module __init__):
    qweight = jax.lax.bitcast_convert_type(
        jax.random.bits(k_qw, (out_features, Kp), dtype=jnp.uint32), jnp.int32)
    qzeros = jax.lax.bitcast_convert_type(
        jax.random.bits(k_qz, (out_features, zeros_width), dtype=jnp.uint32),
        jnp.int32)
    scales = jax.random.uniform(
        k_sc, (out_features, zeros_width * PACK_NUM), jnp.float32,
        minval=0.01, maxval=0.1)
    bias = jax.random.normal(k_b, (out_features,), jnp.float32)
    x = jax.random.normal(k_x, (batch, seq, in_features), jnp.float32)

    fwd = jax.jit(functools.partial(
        wq_linear_gemv_forward,
        in_features=in_features, out_features=out_features,
        group_size=group_size))
    out = jax.block_until_ready(fwd(x, qweight, qzeros, scales, bias))

    ref = reference_forward(x, qweight, qzeros, scales, bias,
                            in_features, group_size)
    assert out.shape == (batch, seq, out_features)
    # bf16 dequant / bf16 MXU inputs with f32 accumulation -> bf16-level tol.
    np.testing.assert_allclose(np.asarray(out), np.asarray(ref),
                               rtol=2e-2, atol=2e-1)
    print("KERNEL_OK")
</pallas_src>

<mosaic_0001>
module attributes {stable_mosaic.version = 11 : i64} {
  func.func @_awq_kernel(%arg0: i32, %arg1: i32, %arg2: memref<16x128xbf16, #tpu.memory_space<vmem>>, %arg3: memref<16x4xf32, #tpu.memory_space<vmem>>, %arg4: memref<16x128xi32, #tpu.memory_space<vmem>>, %arg5: memref<4x128xf32, #tpu.memory_space<vmem>>, %arg6: memref<4x128xf32, #tpu.memory_space<vmem>>, %arg7: memref<1x128xf32, #tpu.memory_space<vmem>>, %arg8: memref<16x128xf32, #tpu.memory_space<vmem>>, %arg9: memref<128x128xbf16, #tpu.memory_space<vmem>>) attributes {dimension_semantics = [#tpu.dimension_semantics<parallel>, #tpu.dimension_semantics<arbitrary>], iteration_bounds = array<i64: 2, 1>, scalar_prefetch = 0 : i64, scratch_operands = 1 : i64, tpu.core_type = #tpu.core_type<tc>, window_params = [{transform_indices = @transform_0, window_bounds = array<i64: 16, 128>}, {transform_indices = @transform_1, window_bounds = array<i64: 16, 4>}, {transform_indices = @transform_2, window_bounds = array<i64: 16, 128>}, {transform_indices = @transform_3, window_bounds = array<i64: 4, 128>}, {transform_indices = @transform_4, window_bounds = array<i64: 4, 128>}, {transform_indices = @transform_5, window_bounds = array<i64: 1, 128>}, {transform_indices = @transform_6, window_bounds = array<i64: 16, 128>}]} {
    %c0_i32 = arith.constant 0 : i32
    %0 = arith.cmpi eq, %arg1, %c0_i32 : i32
    %1 = arith.extui %0 : i1 to i32
    %c0_i32_0 = arith.constant 0 : i32
    %2 = arith.cmpi ne, %1, %c0_i32_0 : i32
    scf.if %2 {
      %c0_15 = arith.constant 0 : index
      %c0_16 = arith.constant 0 : index
      %16 = vector.load %arg6[%c0_15, %c0_16] : memref<4x128xf32, #tpu.memory_space<vmem>>, vector<4x128xf32>
      %17 = arith.truncf %16 : vector<4x128xf32> to vector<4x128xbf16>
      %18 = vector.shape_cast %17 : vector<4x128xbf16> to vector<4x1x128xbf16>
      %19 = vector.shape_cast %18 : vector<4x1x128xbf16> to vector<4x1x128xbf16>
      %20 = vector.broadcast %19 : vector<4x1x128xbf16> to vector<4x4x128xbf16>
      %21 = vector.shape_cast %20 : vector<4x4x128xbf16> to vector<16x128xbf16>
      %c0_17 = arith.constant 0 : index
      %c0_18 = arith.constant 0 : index
      %22 = vector.load %arg4[%c0_17, %c0_18] : memref<16x128xi32, #tpu.memory_space<vmem>>, vector<16x128xi32>
      %c0_i32_19 = arith.constant 0 : i32
      %23 = vector.broadcast %c0_i32_19 : i32 to vector<16x128xi32>
      %24 = arith.shrsi %22, %23 : vector<16x128xi32>
      %c15_i32 = arith.constant 15 : i32
      %25 = vector.broadcast %c15_i32 : i32 to vector<16x128xi32>
      %26 = arith.andi %24, %25 : vector<16x128xi32>
      %27 = arith.sitofp %26 : vector<16x128xi32> to vector<16x128xbf16>
      %28 = arith.mulf %27, %21 : vector<16x128xbf16>
      %c0_20 = arith.constant 0 : index
      %c0_21 = arith.constant 0 : index
      %29 = vector.load %arg9[%c0_20, %c0_21] : memref<128x128xbf16, #tpu.memory_space<vmem>>, vector<16x128xbf16>
      tpu.vector_store %arg9[%c0_20, %c0_21], %28 {strides = array<i32>} : memref<128x128xbf16, #tpu.memory_space<vmem>>, vector<16x128xbf16>,
      %c4_i32 = arith.constant 4 : i32
      %30 = vector.broadcast %c4_i32 : i32 to vector<16x128xi32>
      %31 = arith.shrsi %22, %30 : vector<16x128xi32>
      %c15_i32_22 = arith.constant 15 : i32
      %32 = vector.broadcast %c15_i32_22 : i32 to vector<16x128xi32>
      %33 = arith.andi %31, %32 : vector<16x128xi32>
      %34 = arith.sitofp %33 : vector<16x128xi32> to vector<16x128xbf16>
      %35 = arith.mulf %34, %21 : vector<16x128xbf16>
      %c16 = arith.constant 16 : index
      %c0_23 = arith.constant 0 : index
      %36 = vector.load %arg9[%c16, %c0_23] : memref<128x128xbf16, #tpu.memory_space<vmem>>, vector<16x128xbf16>
      tpu.vector_store %arg9[%c16, %c0_23], %35 {strides = array<i32>} : memref<128x128xbf16, #tpu.memory_space<vmem>>, vector<16x128xbf16>,
      %c8_i32 = arith.constant 8 : i32
      %37 = vector.broadcast %c8_i32 : i32 to vector<16x128xi32>
      %38 = arith.shrsi %22, %37 : vector<16x128xi32>
      %c15_i32_24 = arith.constant 15 : i32
      %39 = vector.broadcast %c15_i32_24 : i32 to vector<16x128xi32>
      %40 = arith.andi %38, %39 : vector<16x128xi32>
      %41 = arith.sitofp %40 : vector<16x128xi32> to vector<16x128xbf16>
      %42 = arith.mulf %41, %21 : vector<16x128xbf16>
      %c32 = arith.constant 32 : index
      %c0_25 = arith.constant 0 : index
      %43 = vector.load %arg9[%c32, %c0_25] : memref<128x128xbf16, #tpu.memory_space<vmem>>, vector<16x128xbf16>
      tpu.vector_store %arg9[%c32, %c0_25], %42 {strides = array<i32>} : memref<128x128xbf16, #tpu.memory_space<vmem>>, vector<16x128xbf16>,
      %c12_i32 = arith.constant 12 : i32
      %44 = vector.broadcast %c12_i32 : i32 to vector<16x128xi32>
      %45 = arith.shrsi %22, %44 : vector<16x128xi32>
      %c15_i32_26 = arith.constant 15 : i32
      %46 = vector.broadcast %c15_i32_26 : i32 to vector<16x128xi32>
      %47 = arith.andi %45, %46 : vector<16x128xi32>
      %48 = arith.sitofp %47 : vector<16x128xi32> to vector<16x128xbf16>
      %49 = arith.mulf %48, %21 : vector<16x128xbf16>
      %c48 = arith.constant 48 : index
      %c0_27 = arith.constant 0 : index
      %50 = vector.load %arg9[%c48, %c0_27] : memref<128x128xbf16, #tpu.memory_space<vmem>>, vector<16x128xbf16>
      tpu.vector_store %arg9[%c48, %c0_27], %49 {strides = array<i32>} : memref<128x128xbf16, #tpu.memory_space<vmem>>, vector<16x128xbf16>,
      %c16_i32 = arith.constant 16 : i32
      %51 = vector.broadcast %c16_i32 : i32 to vector<16x128xi32>
      %52 = arith.shrsi %22, %51 : vector<16x128xi32>
      %c15_i32_28 = arith.constant 15 : i32
      %53 = vector.broadcast %c15_i32_28 : i32 to vector<16x128xi32>
      %54 = arith.andi %52, %53 : vector<16x128xi32>
      %55 = arith.sitofp %54 : vector<16x128xi32> to vector<16x128xbf16>
      %56 = arith.mulf %55, %21 : vector<16x128xbf16>
      %c64 = arith.constant 64 : index
      %c0_29 = arith.constant 0 : index
      %57 = vector.load %arg9[%c64, %c0_29] : memref<128x128xbf16, #tpu.memory_space<vmem>>, vector<16x128xbf16>
      tpu.vector_store %arg9[%c64, %c0_29], %56 {strides = array<i32>} : memref<128x128xbf16, #tpu.memory_space<vmem>>, vector<16x128xbf16>,
      %c20_i32 = arith.constant 20 : i32
      %58 = vector.broadcast %c20_i32 : i32 to vector<16x128xi32>
      %59 = arith.shrsi %22, %58 : vector<16x128xi32>
      %c15_i32_30 = arith.constant 15 : i32
      %60 = vector.broadcast %c15_i32_30 : i32 to vector<16x128xi32>
      %61 = arith.andi %59, %60 : vector<16x128xi32>
      %62 = arith.sitofp %61 : vector<16x128xi32> to vector<16x128xbf16>
      %63 = arith.mulf %62, %21 : vector<16x128xbf16>
      %c80 = arith.constant 80 : index
      %c0_31 = arith.constant 0 : index
      %64 = vector.load %arg9[%c80, %c0_31] : memref<128x128xbf16, #tpu.memory_space<vmem>>, vector<16x128xbf16>
      tpu.vector_store %arg9[%c80, %c0_31], %63 {strides = array<i32>} : memref<128x128xbf16, #tpu.memory_space<vmem>>, vector<16x128xbf16>,
      %c24_i32 = arith.constant 24 : i32
      %65 = vector.broadcast %c24_i32 : i32 to vector<16x128xi32>
      %66 = arith.shrsi %22, %65 : vector<16x128xi32>
      %c15_i32_32 = arith.constant 15 : i32
      %67 = vector.broadcast %c15_i32_32 : i32 to vector<16x128xi32>
      %68 = arith.andi %66, %67 : vector<16x128xi32>
      %69 = arith.sitofp %68 : vector<16x128xi32> to vector<16x128xbf16>
      %70 = arith.mulf %69, %21 : vector<16x128xbf16>
      %c96 = arith.constant 96 : index
      %c0_33 = arith.constant 0 : index
      %71 = vector.load %arg9[%c96, %c0_33] : memref<128x128xbf16, #tpu.memory_space<vmem>>, vector<16x128xbf16>
      tpu.vector_store %arg9[%c96, %c0_33], %70 {strides = array<i32>} : memref<128x128xbf16, #tpu.memory_space<vmem>>, vector<16x128xbf16>,
      %c28_i32 = arith.constant 28 : i32
      %72 = vector.broadcast %c28_i32 : i32 to vector<16x128xi32>
      %73 = arith.shrsi %22, %72 : vector<16x128xi32>
      %c15_i32_34 = arith.constant 15 : i32
      %74 = vector.broadcast %c15_i32_34 : i32 to vector<16x128xi32>
      %75 = arith.andi %73, %74 : vector<16x128xi32>
      %76 = arith.sitofp %75 : vector<16x128xi32> to vector<16x128xbf16>
      %77 = arith.mulf %76, %21 : vector<16x128xbf16>
      %c112 = arith.constant 112 : index
      %c0_35 = arith.constant 0 : index
      %78 = vector.load %arg9[%c112, %c0_35] : memref<128x128xbf16, #tpu.memory_space<vmem>>, vector<16x128xbf16>
      tpu.vector_store %arg9[%c112, %c0_35], %77 {strides = array<i32>} : memref<128x128xbf16, #tpu.memory_space<vmem>>, vector<16x128xbf16>,
    } else {
    }
    %c0 = arith.constant 0 : index
    %c0_1 = arith.constant 0 : index
    %3 = vector.load %arg2[%c0, %c0_1] : memref<16x128xbf16, #tpu.memory_space<vmem>>, vector<16x128xbf16>
    %c0_2 = arith.constant 0 : index
    %c0_3 = arith.constant 0 : index
    %4 = vector.load %arg9[%c0_2, %c0_3] : memref<128x128xbf16, #tpu.memory_space<vmem>>, vector<128x128xbf16>
    %cst = arith.constant dense<0.000000e+00> : vector<16x128xf32>
    %5 = tpu.matmul %3, %4, %cst {dimension_numbers = #tpu.dot_dimension_numbers<[1], [0], [0], [1], [0, 0, 1, 1], [], []>} : vector<16x128xbf16>, vector<128x128xbf16>, vector<16x128xf32> -> vector<16x128xf32>
    %c0_4 = arith.constant 0 : index
    %c0_5 = arith.constant 0 : index
    %6 = vector.load %arg5[%c0_4, %c0_5] : memref<4x128xf32, #tpu.memory_space<vmem>>, vector<4x128xf32>
    %c0_6 = arith.constant 0 : index
    %c0_7 = arith.constant 0 : index
    %7 = vector.load %arg6[%c0_6, %c0_7] : memref<4x128xf32, #tpu.memory_space<vmem>>, vector<4x128xf32>
    %8 = arith.mulf %6, %7 : vector<4x128xf32>
    %c0_8 = arith.constant 0 : index
    %c0_9 = arith.constant 0 : index
    %9 = vector.load %arg3[%c0_8, %c0_9] : memref<16x4xf32, #tpu.memory_space<vmem>>, vector<16x4xf32>
    %cst_10 = arith.constant dense<0.000000e+00> : vector<16x128xf32>
    %10 = tpu.matmul %9, %8, %cst_10 {dimension_numbers = #tpu.dot_dimension_numbers<[1], [0], [0], [1], [0, 0, 1, 1], [], []>} : vector<16x4xf32>, vector<4x128xf32>, vector<16x128xf32> -> vector<16x128xf32>
    %11 = arith.subf %5, %10 : vector<16x128xf32>
    %c0_11 = arith.constant 0 : index
    %c0_12 = arith.constant 0 : index
    %12 = vector.load %arg7[%c0_11, %c0_12] : memref<1x128xf32, #tpu.memory_space<vmem>>, vector<1x128xf32>
    %13 = vector.broadcast %12 : vector<1x128xf32> to vector<16x128xf32>
    %14 = arith.addf %11, %13 : vector<16x128xf32>
    %c0_13 = arith.constant 0 : index
    %c0_14 = arith.constant 0 : index
    %15 = vector.load %arg8[%c0_13, %c0_14] : memref<16x128xf32, #tpu.memory_space<vmem>>, vector<16x128xf32>
    tpu.vector_store %arg8[%c0_13, %c0_14], %14 {strides = array<i32>} : memref<16x128xf32, #tpu.memory_space<vmem>>, vector<16x128xf32>,
    return
  }
  func.func @transform_0(%arg0: i32, %arg1: i32) -> (i32, i32) {
    %c0_i32 = arith.constant 0 : i32
    %c0_i32_0 = arith.constant 0 : i32
    return %arg1, %c0_i32 : i32, i32
  }
  func.func @transform_1(%arg0: i32, %arg1: i32) -> (i32, i32) {
    %c0_i32 = arith.constant 0 : i32
    %c0_i32_0 = arith.constant 0 : i32
    return %arg1, %c0_i32 : i32, i32
  }
  func.func @transform_2(%arg0: i32, %arg1: i32) -> (i32, i32) {
    %c0_i32 = arith.constant 0 : i32
    %c0_i32_0 = arith.constant 0 : i32
    return %c0_i32, %arg0 : i32, i32
  }
  func.func @transform_3(%arg0: i32, %arg1: i32) -> (i32, i32) {
    %c0_i32 = arith.constant 0 : i32
    %c0_i32_0 = arith.constant 0 : i32
    return %c0_i32, %arg0 : i32, i32
  }
  func.func @transform_4(%arg0: i32, %arg1: i32) -> (i32, i32) {
    %c0_i32 = arith.constant 0 : i32
    %c0_i32_0 = arith.constant 0 : i32
    return %c0_i32, %arg0 : i32, i32
  }
  func.func @transform_5(%arg0: i32, %arg1: i32) -> (i32, i32) {
    %c0_i32 = arith.constant 0 : i32
    %c0_i32_0 = arith.constant 0 : i32
    return %c0_i32, %arg0 : i32, i32
  }
  func.func @transform_6(%arg0: i32, %arg1: i32) -> (i32, i32) {
    %c0_i32 = arith.constant 0 : i32
    return %arg1, %arg0 : i32, i32
  }
}

</mosaic_0001>

<bundles_post_ra>
// kernel: wq_linear_gemv_forward.1
= control target key start
LH: loop header
LB: loop body
LE: loop exit
PB: predicated region body
PF: predicated region fallthrough
CT: control target
= control target key end

     0   :  { %11 = vsyncpa [#allocation5], 0  ;;  %s1505_s0 = inlined_call_operand.vmem [shape: bf16[16,128], index: 0, kind: input, shape index: {}]   ;;  %s1506_s1 = inlined_call_operand.vmem [shape: f32[16,4], index: 1, kind: input, shape index: {}]   ;;  %s1507_s2 = inlined_call_operand.vmem [shape: s32[16,256], index: 2, kind: input, shape index: {}]   ;;  %s1508_s3 = inlined_call_operand.vmem [shape: f32[4,256], index: 3, kind: input, shape index: {}]   ;;  %s1509_s4 = inlined_call_operand.vmem [shape: f32[4,256], index: 4, kind: input, shape index: {}]   ;;  %s1510_s5 = inlined_call_operand.vmem [shape: f32[1,256], index: 5, kind: input, shape index: {}]   ;;  %s1511_s6 = inlined_call_operand.hbm [shape: f32[16,256], index: 6, kind: output, shape index: {}]  }
   0x1   :  { %13 = vsyncpa [#allocation5 + $0x1], 0  ;;  %s1289_s21 = smov 0   ;;  %s1291_s22 = smov 0  }
   0x2   :  { %s1293_s23 = smov 0   ;;  %s1295_s24 = smov 0  }
   0x3   :  { %s1297_s25 = smov 0   ;;  %s1299_s26 = smov 0  }
   0x4 LB: > { %s1010_s27 = sadd.s32 4294967295, %s1244_s26   ;;  %s1011_s28 = sadd.s32 4294967294, %s1244_s26   ;;  %s1244_s26 = sphi %s1299_s26, %s19_s26   ;;  %s1240_s25 = sphi %s1297_s25, %s1518_s25   ;;  %s1236_s24 = sphi %s1295_s24, %s1517_s24   ;;  %s1232_s23 = sphi %s1293_s23, %s1516_s23   ;;  %s1228_s22 = sphi %s1291_s22, %s1515_s22   ;;  %s1224_s21 = sphi %s1289_s21, %s1514_s21  }
   0x5   : > { %s31_s29 = sadd.s32 1, %s1240_s25  ;;  %s90_s30 = sadd.s32 1, %s1232_s23 }
   0x6   : > { %p33_p0 = scmp.ge.s32.totalorder %s31_s29, 2  ;;  %p97_p1 = scmp.ne.s32.totalorder %s1232_s23, %s1228_s22 }
   0x7   : > { %p98_p2 = scmp.eq.s32.totalorder %s1244_s26, 0  ;;  %p207_p3 = scmp.eq.s32.totalorder %s1010_s27, 1 }
   0x8   : > { %s1520_s29 = smov (%p33_p0, %s31_s29), 0  ;;  %p212_p6 = scmp.ne.s32.totalorder %s1228_s22, %s1224_s21 }
   0x9   : > { %p99_p4 = por %p98_p2, %p97_p1  ;;  %p1328_p5 = por %p207_p3, %p97_p1 }
   0xa   : > { %s87_s8 = ssub.s32 %s1240_s25, %s1520_s29  ;;  %p213_p8 = scmp.eq.s32.totalorder %s1011_s28, 1 }
   0xb   : > { %p88_p7 = scmp.eq.s32.totalorder %s87_s8, 0  ;;  %p1015_p10 = scmp.ge.s32.totalorder %s1244_s26, 2 }
   0xc   : > { %p1339_p9 = por %p213_p8, %p212_p6 }
   0xd   : > { %s1337_s9 = scalar_select %p88_p7, %s1232_s23, %s90_s30  }
   0xe   : > { %247 = sbr.rel (%p1015_p10) target bundleno = 24 (0x18), region = 24 }
  0x13   : > { %250 = sbr.rel (!%p99_p4) target bundleno = 24 (0x18), region = 28  ;;  %s252_s11 = sand.u32 (%p99_p4), 1, %s1232_s23  }
  0x14   : > { %s1017_s12 = sshll.u32 (%p99_p4), %s1240_s25, 3  ;;  %s1016_s13 = sshll.u32 (%p99_p4), %s252_s11, 4 }
  0x15   : > { %s256_s16 = scalar_lea.vmem (%p99_p4), %s1507_s2, %s1017_s12  ;;  %s254_s17 = scalar_lea.vmem (%p99_p4), [#allocation3], %s1016_s13 }
  0x16   : > { %v287_v0 = vld [vmem:[%s256_s16] sm:$0xff] (%p99_p4)  ;;  %v289_v1 = vld [vmem:[%s256_s16 + $0x10] sm:$0xff] (%p99_p4) }
  0x17   : > { %288 = vst [vmem:[%s254_s17] sm:$0xff] (%p99_p4), %v287_v0  ;;  %290 = vst [vmem:[%s254_s17 + $0x8] sm:$0xff] (%p99_p4), %v289_v1 }
  0x18 PF: > { %p1018_p11 = scmp.ge.s32.totalorder %s1244_s26, 1  ;;  %p315_p12 = scmp.lt.s32.totalorder %s1244_s26, 3 }
  0x1a   : > { %p316_p13 = pnand %p1018_p11, %p315_p12 }
  0x1b   : > { %s322_s18 = sand.u32 (!%p316_p13), 1, %s1228_s22   ;;  %p384_p0 = scmp.lt.s32.totalorder (!%p316_p13), %s1236_s24, 1 }
  0x1c   : > { %319 = sbr.rel (%p316_p13) target bundleno = 321 (0x141), region = 78  ;;  %s1358_s19 = sshll.u32 (!%p316_p13), %s322_s18, 4 }
  0x1d   : > { %s324_s30 = scalar_lea.vmem (!%p316_p13), [#allocation3], %s1358_s19  ;;  %s1057_s15 = sshll.u32 (!%p316_p13), %s1236_s24, 7 }
  0x1e   : > { %s1455_s17 = scalar_lea.hbm (!%p316_p13), %s1511_s6, %s1057_s15  ;;  %s1250_s20 = smov (!%p316_p13), [#allocation4]  }
  0x1f   : > { %s1172_s27 = sshll.u32 (!%p316_p13), %s1250_s20, 4  ;;  %s1173_s27 = int_to_ptr.vmem [resolvable:$false] %s1172_s27 }
  0x21   : > { %v407_v2 = vlaneseq  ;;  %v1246_v3 = vmov 0.0   ;;  %v1247_v4 = vmov 1966171168   ;;  %v752_v6 = vld [vmem:[%s1506_s1] sm:$0xff]  ;;  %vm754_vm0 = vcmask 31744   ;;  %s1365_s28 = scalar_select %p384_p0, %s1236_s24, 1 }
  0x22   : > { %1072 = vmatprep.subr.bf16.mxu0 %v1246_v3  ;;  %v405_v5 = vunpack.c.l.s4 %v1247_v4  ;;  %1094 = vmatprep.mubr.msk.f32.mxu1 %vm754_vm0, %v752_v6  ;;  %v1248_v9 = vmov 1983009808   ;;  %vm1249_vm1 = vmmov 0   ;;  %v1369_v11 = vld [vmem:[%s324_s30] sm:$0xff]  ;;  %v1371_v12 = vld [vmem:[%s324_s30 + $0x8] sm:$0xff]  ;;  %vm761_vm2 = vcmask 1043456  }
  0x23   : > { %v408_v7 = vshrl.u32 %v407_v2, 7  ;;  %v492_v10 = vunpack.c.l.s4 %v1248_v9  ;;  %1088 = vmatprep.mubr.msk.bf16.mxu0 %vm1249_vm1, %v1246_v3  ;;  %s1021_s8 = sshll.u32 %s1365_s28, 2  ;;  %v602_v13 = vshra.s32 %v1369_v11, 24  ;;  %v603_v14 = vshra.s32 %v1371_v12, 24  ;;  %v753_v6 = vld [vmem:[%s1506_s1 + $0x8] sm:$0xff]  ;;  %s394_s12 = scalar_lea.vmem %s1510_s5, %s1365_s28 }
  0x24   : > { %v406_v8 = vunpack.c.0.s8 %v405_v5  ;;  %s1381_s13 = scalar_lea.vmem %s1509_s4, %s1021_s8  ;;  %v585_v16 = vshra.s32 %v1369_v11, 20  ;;  %v1039_v19 = vshrl.u32 %v1369_v11, 28  ;;  %v1040_v21 = vshrl.u32 %v1371_v12, 28  ;;  %s387_s16 = scalar_lea.vmem %s1508_s3, %s1021_s8 }
  0x25   : > { %v401_v17 = vld [vmem:[%s1381_s13] sm:$0xf]  ;;  %v493_v18 = vunpack.c.0.s8 %v492_v10  ;;  %v586_v22 = vshra.s32 %v1371_v12, 20  ;;  %v1388_v23 = vand.u32 15, %v602_v13  ;;  %v1390_v24 = vand.u32 15, %v603_v14  ;;  %s1174_s30 = scalar_lea.vmem %s1173_s27, 512 }
  0x26   : > { %v409_v15 = vsub.s32 %v406_v8, %v408_v7  ;;  %v402_v20 = vpack.c.bf16 %v401_v17, %v401_v17  ;;  %v1392_v26 = vand.u32 15, %v585_v16  ;;  %v436_v27 = vsub.s32 0, %v408_v7  ;;  %v749_v51 = vld [vmem:[%s387_s16] sm:$0xf] }
  0x27   : > { %v1394_v28 = vsub.s32 %v493_v18, %v408_v7  ;;  %v1396_v29 = vcvt.s32.f32 %v1039_v19  ;;  %v568_v30 = vshra.s32 %v1369_v11, 16  ;;  %v1399_v33 = vcvt.s32.f32 %v1040_v21  ;;  %v750_v52 = vld [vmem:[%s1381_s13] sm:$0xf]  ;;  %s371_s13 = scalar_lea.vmem [#allocation4], %s1358_s19  ;;  %s1459_s19 = scalar_lea.sflag [#allocation5], %s322_s18 }
  0x28   : > { %v410_v25 = vrot.slane %v402_v20, %v409_v15  ;;  %v1401_v34 = vand.u32 15, %v586_v22  ;;  %v606_v35 = vcvt.s32.f32 %v1388_v23  ;;  %v607_v36 = vcvt.s32.f32 %v1390_v24  ;;  %s869_s14 = sshll.u32 %s371_s13, 4  ;;  %s1450_s14 = int_to_ptr.vmem [resolvable:$true] %s869_s14 }
  0x29   : > { %v569_v37 = vshra.s32 %v1371_v12, 16  ;;  %v551_v38 = vshra.s32 %v1369_v11, 12  ;;  %v589_v42 = vcvt.s32.f32 %v1392_v26  ;;  %v570_v43 = vand.u32 15, %v568_v30  ;;  %s1168_s24 = scalar_lea.vmem %s1450_s14, 256  ;;  %p1175_p4 = scmp.lt.s32.totalorder %s1450_s14, %s1173_s27 }
  0x2a   : > { %v411_v31 = vcombine.high %v410_v25, %v410_v25  ;;  %v418_v32 = vrot.slane %v410_v25, %v409_v15  ;;  %v552_v44 = vshra.s32 %v1371_v12, 12  ;;  %v534_v45 = vshra.s32 %v1369_v11, 8  ;;  %p1169_p1 = scmp.ne.s32.totalorder %s1450_s14, %s1168_s24  ;;  %p1176_p6 = scmp.lt.s32.totalorder %s1174_s30, %s1168_s24 }
  0x2b   : > { %v535_v46 = vshra.s32 %v1371_v12, 8  ;;  %v571_v53 = vand.u32 15, %v569_v37  ;;  %v553_v54 = vand.u32 15, %v551_v38  ;;  %v517_v55 = vshra.s32 %v1369_v11, 4 }
  0x2c   : > { %v425_v39 = vrot.slane %v411_v31, %v409_v15  ;;  %v427_v40 = vunpack.i.h.s16 %v418_v32  ;;  %v1023_v41 = vpack.i.b16 %v418_v32, %v418_v32  ;;  %v518_v56 = vshra.s32 %v1371_v12, 4  ;;  %p1170_p2 = pnand %p1169_p1, %p1328_p5  ;;  %p1177_p7 = por %p1176_p6, %p1175_p4 }
  0x2d   : > { %v554_v61 = vand.u32 15, %v552_v44  ;;  %v536_v62 = vand.u32 15, %v534_v45  ;;  %v537_v63 = vand.u32 15, %v535_v46  ;;  %v751_v0 = vmul.f32 %v750_v52, %v749_v51 }
  0x2e   : > { %v429_v47 = vunpack.i.h.s16 %v425_v39  ;;  %v431_v48 = vpack.i.b16 %v427_v40, %v427_v40  ;;  %v1024_v49 = vpack.i.b16 %v425_v39, %v425_v39  ;;  %v437_v50 = vrot.slane %v1023_v41, %v436_v27  ;;  %p1171_p3 = pneg %p1170_p2 }
  0x2f   : > { %v519_v7 = vand.u32 15, %v517_v55  ;;  %v520_v8 = vand.u32 15, %v518_v56  ;;  %1092 = vmatprep.subr.msk.mxu1 %vm761_vm2, %v751_v0  ;;  %v480_v9 = vand.u32 15, %v1369_v11  ;;  %v481_v10 = vand.u32 15, %v1371_v12 }
  0x30   : > { %v433_v57 = vpack.i.b16 %v429_v47, %v429_v47  ;;  %v441_v58 = vrot.slane %v431_v48, %v436_v27  ;;  %v445_v59 = vrot.slane %v1024_v49, %v436_v27  ;;  %v451_v60 = vpack.i.b16 %v437_v50, %v437_v50  ;;  %1093 = vmatpush3.msk.msra.mxu1 %vm761_vm2, %v751_v0  ;;  %p1178_p8 = pnand %p1177_p7, %p1171_p3 }
  0x31   : > { %v590_v16 = vcvt.s32.f32 %v1401_v34  ;;  %v572_v17 = vcvt.s32.f32 %v570_v43  ;;  %v573_v18 = vcvt.s32.f32 %v571_v53  ;;  %v555_v19 = vcvt.s32.f32 %v553_v54  ;;  %1095 = vmatmul.mubr.msk.f32.vlgmr.msra.gmra.mxu1 %vm754_vm0, %v753_v6 }
  0x32   : > { %v449_v1 = vrot.slane %v433_v57, %v436_v27  ;;  %v456_v2 = vrot.slane %v451_v60, %v436_v27  ;;  %v458_v4 = vpack.i.b16 %v441_v58, %v441_v58  ;;  %v465_v5 = vpack.i.b16 %v445_v59, %v445_v59 }
  0x33   : > { %v556_v20 = vcvt.s32.f32 %v554_v61  ;;  %v538_v24 = vcvt.s32.f32 %v536_v62  ;;  %v539_v25 = vcvt.s32.f32 %v537_v63  ;;  %v521_v11 = vcvt.s32.f32 %v519_v7 }
  0x34   : > { %v463_v13 = vrot.slane %v458_v4, %v436_v27  ;;  %v470_v14 = vrot.slane %v465_v5, %v436_v27  ;;  %v472_v15 = vpack.i.b16 %v449_v1, %v449_v1  ;;  %v522_v26 = vcvt.s32.f32 %v520_v8  ;;  %v1167_v8 = vld [vmem:[%s1505_s0] sm:$0xff]  }
  0x35   : > { %v482_v12 = vcvt.s32.f32 %v480_v9  ;;  %v483_v30 = vcvt.s32.f32 %v481_v10  ;;  %v625_v34 = vpack.c.bf16 %v1399_v33, %v1396_v29  ;;  %v608_v38 = vpack.c.bf16 %v607_v36, %v606_v35 }
  0x36   : > { %v477_v21 = vrot.slane %v472_v15, %v436_v27  ;;  %v489_v22 = vcombine.low %v456_v2, %v463_v13  ;;  %v591_v39 = vpack.c.bf16 %v590_v16, %v589_v42  ;;  %v574_v27 = vpack.c.bf16 %v573_v18, %v572_v17 }
  0x37   : > { %v557_v40 = vpack.c.bf16 %v556_v20, %v555_v19  ;;  %v540_v41 = vpack.c.bf16 %v539_v25, %v538_v24  ;;  %v523_v43 = vpack.c.bf16 %v522_v26, %v521_v11  ;;  %v484_v44 = vpack.c.bf16 %v483_v30, %v482_v12 }
  0x38   : > { %v490_v31 = vcombine.low %v470_v14, %v477_v21  ;;  %v497_v32 = vrot.slane %v489_v22, %v1394_v28  ;;  %v1055_v14 = vld [vmem:[%s394_s12] ss:$0 sm:$0xff] }
  0x3a   : > { %v504_v37 = vrot.slane %v490_v31, %v1394_v28 }
  0x3c   : > { %v505_v45 = vcombine.low %v497_v32, %v504_v37 }
  0x3e   : > { %v626_v46 = vmul.bf16 %v625_v34, %v505_v45  ;;  %v609_v47 = vmul.bf16 %v608_v38, %v505_v45  ;;  %v592_v48 = vmul.bf16 %v591_v39, %v505_v45  ;;  %v575_v49 = vmul.bf16 %v574_v27, %v505_v45 }
  0x3f   : > { %v558_v50 = vmul.bf16 %v557_v40, %v505_v45  ;;  %v541_v51 = vmul.bf16 %v540_v41, %v505_v45  ;;  %v524_v52 = vmul.bf16 %v523_v43, %v505_v45  ;;  %v507_v29 = vmul.bf16 %v505_v45, %v484_v44 }
  0x40   : > { %v1041_v33 = vcombine.low %v626_v46, %v626_v46  ;;  %v1042_v28 = vcombine.high %v626_v46, %v626_v46  ;;  %v1037_v53 = vcombine.low %v609_v47, %v609_v47  ;;  %v1038_v23 = vcombine.high %v609_v47, %v609_v47 }
  0x41   : > { %v1035_v35 = vcombine.low %v592_v48, %v592_v48  ;;  %v1036_v36 = vcombine.high %v592_v48, %v592_v48  ;;  %v1033_v42 = vcombine.low %v575_v49, %v575_v49  ;;  %v1034_v54 = vcombine.high %v575_v49, %v575_v49 }
  0x42   : > { %634 = vst [vmem:[#allocation2 + $0x38] sm:$0xf] %v1041_v33  ;;  %635 = vst [vmem:[#allocation2 + $0x3c] sm:$0xf] %v1042_v28  ;;  %v1031_v55 = vcombine.low %v558_v50, %v558_v50  ;;  %v1032_v56 = vcombine.high %v558_v50, %v558_v50  ;;  %v1029_v57 = vcombine.low %v541_v51, %v541_v51 }
  0x43   : > { %617 = vst [vmem:[#allocation2 + $0x30] sm:$0xf] %v1037_v53  ;;  %618 = vst [vmem:[#allocation2 + $0x34] sm:$0xf] %v1038_v23  ;;  %v1030_v58 = vcombine.high %v541_v51, %v541_v51  ;;  %v1027_v59 = vcombine.low %v524_v52, %v524_v52  ;;  %v1028_v60 = vcombine.high %v524_v52, %v524_v52 }
  0x44   : > { %600 = vst [vmem:[#allocation2 + $0x28] sm:$0xf] %v1035_v35  ;;  %601 = vst [vmem:[#allocation2 + $0x2c] sm:$0xf] %v1036_v36  ;;  %v1025_v61 = vcombine.low %v507_v29, %v507_v29  ;;  %v1026_v62 = vcombine.high %v507_v29, %v507_v29 }
  0x45   : > { %583 = vst [vmem:[#allocation2 + $0x20] sm:$0xf] %v1033_v42  ;;  %584 = vst [vmem:[#allocation2 + $0x24] sm:$0xf] %v1034_v54 }
  0x46   : > { %566 = vst [vmem:[#allocation2 + $0x18] sm:$0xf] %v1031_v55  ;;  %567 = vst [vmem:[#allocation2 + $0x1c] sm:$0xf] %v1032_v56 }
  0x47   : > { %549 = vst [vmem:[#allocation2 + $0x10] sm:$0xf] %v1029_v57  ;;  %550 = vst [vmem:[#allocation2 + $0x14] sm:$0xf] %v1030_v58 }
  0x48   : > { %532 = vst [vmem:[#allocation2 + $0x8] sm:$0xf] %v1027_v59  ;;  %533 = vst [vmem:[#allocation2 + $0xc] sm:$0xf] %v1028_v60 }
  0x49   : > { %515 = vst [vmem:[#allocation2] sm:$0xf] %v1025_v61  ;;  %516 = vst [vmem:[#allocation2 + $0x4] sm:$0xf] %v1026_v62  ;;  %v1159_v63 = vld [vmem:[#allocation2 + $0x38] sm:$0xff]  }
  0x4a   : > { %1073 = vmatpush3.bf16.msra.mxu0 %v1159_v63  ;;  %v1160_v0 = vld [vmem:[#allocation2 + $0x30] sm:$0xff]  }
  0x4b   : > { %1074 = vmatprep.subr.bf16.mxu0 %v1246_v3  ;;  %v1161_v1 = vld [vmem:[#allocation2 + $0x28] sm:$0xff]  }
  0x4c   : > { %v1162_v2 = vld [vmem:[#allocation2 + $0x20] sm:$0xff]  }
  0x4d   : > { %v1163_v4 = vld [vmem:[#allocation2 + $0x18] sm:$0xff]  }
  0x4e   : > { %1075 = vmatpush3.bf16.msra.mxu0 %v1160_v0  ;;  %v1164_v5 = vld [vmem:[#allocation2 + $0x10] sm:$0xff]  }
  0x4f   : > { %1076 = vmatprep.subr.bf16.mxu0 %v1246_v3  ;;  %v1165_v6 = vld [vmem:[#allocation2 + $0x8] sm:$0xff]  }
  0x50   : > { %v1166_v7 = vld [vmem:[#allocation2] sm:$0xff]  }
  0x52   : > { %1077 = vmatpush3.bf16.msra.mxu0 %v1161_v1 }
  0x53   : > { %1078 = vmatprep.subr.bf16.mxu0 %v1246_v3 }
  0x56   : > { %1079 = vmatpush3.bf16.msra.mxu0 %v1162_v2 }
  0x57   : > { %1080 = vmatprep.subr.bf16.mxu0 %v1246_v3 }
  0x5a   : > { %1081 = vmatpush3.bf16.msra.mxu0 %v1163_v4 }
  0x5b   : > { %1082 = vmatprep.subr.bf16.mxu0 %v1246_v3 }
  0x5e   : > { %1083 = vmatpush3.bf16.msra.mxu0 %v1164_v5 }
  0x5f   : > { %1084 = vmatprep.subr.bf16.mxu0 %v1246_v3 }
  0x62   : > { %1085 = vmatpush3.bf16.msra.mxu0 %v1165_v6 }
  0x63   : > { %1086 = vmatprep.subr.bf16.mxu0 %v1246_v3 }
  0x66   : > { %1087 = vmatpush3.bf16.msra.mxu0 %v1166_v7 }
  0x69   : > { %1089 = vmatmul.mubr.bf16.vlgmr.msra.gmra.mxu0 %v1167_v8 }
  0xf1   : > { %v1096_v9 = vpop.f32.mrf.mxu1 }
  0xf3   : > { %v831_v10 = vpop.f32.mrf.mxu1 }
 0x129   : > { %v742_v13 = vpop.f32.mrf.mxu0 }
 0x12a   : > { %v840_v15 = vsub.f32 %v742_v13, %v831_v10 }
 0x12b   : > { %v1090_v3 = vpop.f32.mrf.mxu0 }
 0x12c   : > { %v849_v16 = vadd.f32 %v1055_v14, %v840_v15 }
 0x12d   : > { %v745_v17 = vpop.f32.mrf.mxu0 }
 0x12e   : > { %851 = vst [vmem:[%s371_s13] sm:$0xff] %v849_v16  ;;  %v841_v18 = vsub.f32 %v745_v17, %v1096_v9 }
 0x12f   : > { %v1091_v19 = vpop.f32.mrf.mxu0 }
 0x130   : > { %v850_v20 = vadd.f32 %v1055_v14, %v841_v18 }
 0x132   : > { %852 = vst [vmem:[%s371_s13 + $0x8] sm:$0xff] %v850_v20 }
 0x133   : > { %1181 = shalt.err (!%p1178_p8)
}
 0x134   : > { %s1182_s18 = scalar_lea.hbm %s1455_s17, 256  ;;  %s1186_s12 = scalar_lea.hbm %s1511_s6, 512 }
 0x135   : > { %p1183_p11 = scmp.ne.s32.totalorder %s1455_s17, %s1182_s18  ;;  %p1187_p0 = scmp.lt.s32.totalorder %s1455_s17, %s1511_s6 }
 0x136   : > { %p1188_p1 = scmp.lt.s32.totalorder %s1186_s12, %s1182_s18 }
 0x137   : > { %p1184_p12 = pnand %p1183_p11, %p1328_p5 }
 0x138   : > { %p1189_p2 = por %p1188_p1, %p1187_p0 }
 0x139   : > { %p1185_p13 = pneg %p1184_p12 }
 0x13b   : > { %p1190_p3 = pnand %p1189_p2, %p1185_p13 }
 0x13d   : > { %1193 = shalt.err (!%p1190_p3)
}
 0x13e   : > { %s1251_s28 = smov 128   ;;  %s1252_s16 = smov 256  }
 0x13f   : > { %s1253_s24 = smov 8  }
 0x140   : > { %1097 = dma.vmem_to_hbm [thread:$0]  (%p1328_p5), %s1450_s14, 256, %s1455_s17, %s1459_s19, %s1251_s28, %s1252_s16, %s1253_s24  }
 0x141 PF: > { %s884_s20 = sand.u32 1, %s1224_s21   ;;  %p1100_p4 = pnand %p1015_p10, %p1339_p9 }
 0x142   : > { %s885_s27 = scalar_lea.sflag [#allocation5], %s884_s20 }
 0x143   : > { %p1101_p6 = pneg %p1100_p4 }
 0x145   : > { %1219 = dma.done.wait (%p1101_p6), %s885_s27, 256  }
 0x146   : > { %1221 = vsyncadd (%p1101_p6), %s885_s27, 4294967040  ;;  %s19_s26 = sadd.s32 1, %s1244_s26   ;;  %s1514_s21 = smov %s1228_s22 }
 0x147   : > { %p16_p7 = scmp.ge.s32.totalorder %s19_s26, 4   ;;  %s1515_s22 = smov %s1232_s23 }
 0x148   : > { %s1516_s23 = smov %s1337_s9  ;;  %s1517_s24 = smov %s1240_s25 }
 0x149   : > { %s1518_s25 = smov %s1520_s29  ;;  %18 = sbr.rel (!%p16_p7) target bundleno = 4 (0x4), region = 141 }
 0x14e   :  { %890 = vsyncpa [#allocation5], 1 }
 0x14f   :  { %892 = vsyncpa [#allocation5 + $0x1], 1 }

</bundles_post_ra>
